<compile_context>
chip_gen: v6e
topology: v6e:2x2x1
jax: 0.10.0
libtpu: 0.0.40
codegen_flags: <defaults>
</compile_context>

<pallas_src>
import functools
import math

import jax
import jax.numpy as jnp
from jax.experimental import pallas as pl
from jax.experimental.pallas import tpu as pltpu


# ----------------------------- kernels --------------------------------------


def _expand_kernel(x_ref, o_ref):
    # Pure broadcast-and-store: every x_ref dim is either equal to the o_ref
    # dim or 1 (leading, sublane or lane broadcast).
    o_ref[...] = jnp.broadcast_to(x_ref[...], o_ref.shape)


def _expand_lane_tile_kernel(x_ref, o_ref, *, reps, n_in):
    # x_ref: (gx, 1, n_in) with gx in {1, g}; o_ref: (g, m, reps * n_in).
    # The broadcast "row repeat" is folded into the lane axis of the output
    # block: sublane broadcast (cheap) + `reps` static lane-slice stores.
    # The stores are VMEM-local; the HBM writeback DMA stays fully lane-dense.
    g, m, _ = o_ref.shape
    blk = jnp.broadcast_to(x_ref[...], (g, m, n_in))
    for k in range(reps):  # static unroll, reps <= 64
        o_ref[:, :, k * n_in:(k + 1) * n_in] = blk


# ----------------------------- helpers ---------------------------------------


def _sublane_multiple(dtype):
    itemsize = jnp.dtype(dtype).itemsize
    table = {4: 8, 2: 16, 1: 32}
    if itemsize not in table:
        raise NotImplementedError(
            f"expand: dtype {dtype} (itemsize={itemsize}) has no native TPU tile "
            "layout; cast to a <=4-byte dtype before calling the kernel.")
    return table[itemsize]


def _vmem_policy():
    """Per-generation (v5e/v6e vs v7x) block-size and VMEM-limit policy."""
    vmem_cap = 64 << 20  # conservative default = v7x per-TensorCore VMEM
    try:
        info = pltpu.get_tpu_info()
        vmem_cap = int(getattr(info, "vmem_capacity_bytes", vmem_cap))
    except Exception:
        pass
    if vmem_cap >= (96 << 20):        # v5e / v6e: 128 MiB VMEM
        max_block_bytes = 8 << 20
    else:                             # v7x: 64 MiB per TensorCore
        max_block_bytes = 6 << 20
    vmem_limit_cap = min((3 * vmem_cap) // 4, 96 << 20)   # ~48 MiB on v7x
    return max_block_bytes, vmem_limit_cap


def _choose_lane_reps(m_out, n_out, *, lane_target=512, max_reps=64):
    """Pick a repeat factor r | m_out so that r*n_out is a lane-friendly width."""
    best_key, best_r = None, 1
    r_max = min(m_out, max(1, lane_target // max(1, n_out)), max_reps)
    for r in range(1, r_max + 1):
        if m_out % r:
            continue
        d = r * n_out
        key = (d % 128 == 0 and d >= 128, d >= 128, d)
        if best_key is None or key > best_key:
            best_key, best_r = key, r
    return best_r


def _cdiv(a, b):
    return -(-a // b)


# ----------------------------- main wrapper ----------------------------------


def expand(x, target_shape):
    """Equivalent of torch.Tensor.expand(target_shape) as a Pallas TPU kernel."""
    target = list(target_shape)
    ndim_out = len(target)
    if ndim_out < x.ndim:
        raise ValueError("expand: target rank must be >= input rank")

    n_new = ndim_out - x.ndim
    in_shape = [1] * n_new + list(x.shape)

    # Resolve -1 (keep input size) and validate torch.expand broadcast rules.
    out_shape = []
    for d, (t, i) in enumerate(zip(target, in_shape)):
        if t == -1:
            if d < n_new:
                raise ValueError("expand: -1 not allowed for new leading dims")
            out_shape.append(int(i))
        else:
            if i != 1 and i != t:
                raise ValueError(f"expand: cannot expand dim of size {i} to {t}")
            out_shape.append(int(t))
    out_shape = tuple(out_shape)

    if math.prod(out_shape) == 0:
        return jnp.zeros(out_shape, x.dtype)

    itemsize = jnp.dtype(x.dtype).itemsize
    sub = _sublane_multiple(x.dtype)
    out_bytes = math.prod(out_shape) * itemsize
    max_block_bytes, vmem_limit_cap = _vmem_policy()

    # ---- Canonicalize: drop out==1 dims, merge adjacent same-class dims ----
    # Each canonical dim is (in_size, out_size); "broadcast" dims have in==1.
    dims = []
    for i_s, o_s in zip(in_shape, out_shape):
        if o_s == 1:
            continue
        is_b = (i_s == 1)
        if dims and (dims[-1][0] == 1) == is_b:
            pi, po = dims[-1]
            dims[-1] = (pi * i_s, po * o_s)
        else:
            dims.append((int(i_s), int(o_s)))
    if not dims:
        dims = [(1, 1)]
    in_c = [d[0] for d in dims]
    out_c = [d[1] for d in dims]
    x_c = x.reshape(tuple(in_c))

    # ---- Wrapper-side lane densification (small, bounded materialization) ----
    # Only worth a tiny amount of extra HBM traffic: <= min(8 MiB, out/32).
    dense_budget = min(8 << 20, max(128 << 10, out_bytes // 32))
    while len(out_c) >= 2 and out_c[-1] < 128:
        merged = out_c[-2] * out_c[-1]
        if merged > 2048:
            break
        new_in_elems = math.prod(in_c[:-2]) * merged
        if new_in_elems * itemsize > dense_budget:
            break
        x_c = jnp.broadcast_to(x_c, tuple(in_c[:-2]) + (out_c[-2], out_c[-1]))
        x_c = x_c.reshape(tuple(in_c[:-2]) + (merged,))
        in_c = in_c[:-2] + [merged]
        out_c = out_c[:-2] + [merged]
        # Re-merge with a preceding kept dim (pure reshape on both sides).
        if len(out_c) >= 2 and in_c[-2] == out_c[-2]:
            in_c = in_c[:-2] + [in_c[-2] * in_c[-1]]
            out_c = out_c[:-2] + [out_c[-2] * out_c[-1]]
            x_c = x_c.reshape(tuple(in_c))

    # ---- In-kernel lane densification fallback -------------------------------
    # Trailing pair = (broadcast M, kept narrow N): fold part of the M-repeat
    # into the lane axis of the *output presentation* and do the repeat inside
    # the kernel. No wrapper-side HBM materialization.
    lane_reps = 1
    if (len(out_c) >= 2 and out_c[-1] < 128
            and in_c[-2] == 1 and in_c[-1] == out_c[-1] and out_c[-2] > 1):
        lane_reps = _choose_lane_reps(out_c[-2], out_c[-1])
        if lane_reps <= 1:
            lane_reps = 1

    # Pad to at least (lead..., M, N).
    while len(out_c) < 2:
        in_c = [1] + in_c
        out_c = [1] + out_c

    lead_in = tuple(in_c[:-2])
    lead_out = tuple(out_c[:-2])
    M_in, N_in = in_c[-2], in_c[-1]
    M_out, N_out = out_c[-2], out_c[-1]
    G_in = math.prod(lead_in)
    G_out = math.prod(lead_out)

    x_p = x_c.reshape((G_in, M_in, N_in))

    if lane_reps > 1:
        # Presented output: (G_out, M_out // r, r * N_out) — lane-dense last dim.
        Mp_out = M_out // lane_reps
        Np_out = lane_reps * N_out
        kernel = functools.partial(_expand_lane_tile_kernel,
                                   reps=lane_reps, n_in=N_out)
    else:
        Mp_out, Np_out = M_out, N_out
        kernel = _expand_kernel

    # ---- Adaptive block sizing (target ~max_block_bytes output blocks) ------
    elems_budget = max(128, max_block_bytes // itemsize)
    if Np_out <= elems_budget:
        N_b = Np_out                                     # full dim (always legal)
    else:
        N_b = max(128, (elems_budget // 128) * 128)      # multiple of 128
    max_rows = max(1, max_block_bytes // (N_b * itemsize))
    if Mp_out <= max_rows:
        M_b = Mp_out                                     # full dim
    elif max_rows >= sub:
        M_b = (max_rows // sub) * sub                    # sublane-aligned
    else:
        # Very wide rows: shrink N_b so a sublane-aligned row count still fits.
        N_b = max(128, ((max_block_bytes // (sub * itemsize)) // 128) * 128)
        max_rows = max(1, max_block_bytes // (N_b * itemsize))
        M_b = max(sub, (max_rows // sub) * sub)

    # Fold the leading axis into the block when it is fully broadcast or fully
    # kept; mixed leading dims keep g_b == 1 (per-element index decomposition).
    lead_kept = (G_out > 1 and G_in == G_out and lead_in == lead_out)
    lead_bcast = (G_out > 1 and G_in == 1)
    tile_bytes = max(1, M_b * N_b * itemsize)
    if lead_kept or lead_bcast:
        g_b = int(min(G_out, max(1, max_block_bytes // tile_bytes)))
    else:
        g_b = 1

    # Keep >=2 blocks on big outputs so both v7x TensorCores get work.
    def _num_blocks():
        return _cdiv(G_out, g_b) * _cdiv(Mp_out, M_b) * _cdiv(Np_out, N_b)

    if out_bytes > (1 << 20) and _num_blocks() == 1:
        if G_out > 1:
            g_b = _cdiv(G_out, 2)
        elif Mp_out >= 2 * sub:
            M_b = ((_cdiv(Mp_out, 2) + sub - 1) // sub) * sub
        elif Np_out >= 256 and lane_reps == 1:
            N_b = ((_cdiv(Np_out, 2) + 127) // 128) * 128

    assert lane_reps == 1 or N_b == Np_out  # lane-tile kernel needs full rows

    grid = (pl.cdiv(G_out, g_b), pl.cdiv(Mp_out, M_b), pl.cdiv(Np_out, N_b))

    # ---- Input block shape & index maps --------------------------------------
    gin_b = g_b if lead_kept else 1
    if lane_reps > 1:
        in_blk = (gin_b, 1, N_in)                        # whole (tiny) row
    else:
        in_blk = (gin_b, 1 if M_in == 1 else M_b, 1 if N_in == 1 else N_b)

    lead_strides = [math.prod(lead_out[d + 1:]) for d in range(len(lead_out))]

    def in_index_map(g, m, n):
        if lead_kept:
            gi = g                                       # same block index (g_b-sized)
        elif G_in == 1:
            gi = 0                                       # broadcast lead: never re-fetch
        else:
            # Mixed leading dims (g_b == 1 here, so g is an element index):
            # decompose and keep only the kept-dim components.
            gi = 0
            rem = g
            for d in range(len(lead_out)):
                stride = lead_strides[d]
                idx = rem // stride
                rem = rem % stride
                if lead_in[d] != 1:
                    gi = gi * lead_in[d] + idx
        if lane_reps > 1:
            return (gi, 0, 0)
        mi = 0 if M_in == 1 else m
        ni = 0 if N_in == 1 else n
        return (gi, mi, ni)

    def out_index_map(g, m, n):
        return (g, m, n)

    # ---- VMEM accounting ------------------------------------------------------
    out_blk_bytes = g_b * M_b * N_b * itemsize
    in_blk_bytes = math.prod(in_blk) * itemsize
    need = 2 * out_blk_bytes + 2 * in_blk_bytes + (2 << 20)
    vmem_limit = int(min(vmem_limit_cap, max(32 << 20, need)))

    result = pl.pallas_call(
        kernel,
        out_shape=jax.ShapeDtypeStruct((G_out, Mp_out, Np_out), x.dtype),
        grid=grid,
        in_specs=[pl.BlockSpec(in_blk, in_index_map)],
        out_specs=pl.BlockSpec((g_b, M_b, N_b), out_index_map),
        compiler_params=pltpu.CompilerParams(
            dimension_semantics=("parallel", "parallel", "parallel"),
            vmem_limit_bytes=vmem_limit,
        ),
        cost_estimate=pl.CostEstimate(
            flops=0, transcendentals=0,
            bytes_accessed=out_bytes + math.prod(x_p.shape) * itemsize),
    )(x_p)

    return result.reshape(out_shape)


class ExpandModel:
    """Mirror of the PyTorch module: forward(x) == x.expand(shape)."""

    def __init__(self, shape):
        self.shape = list(shape)

    def __call__(self, x):
        return expand(x, self.shape)


if __name__ == "__main__":
    key = jax.random.PRNGKey(0)
    k1, k2, k3, k4, k5 = jax.random.split(key, 5)

    # 1) Spec config: ExpandModel([2, 4, 16, 16]) on x of shape (1, 4, 1, 16).
    model = ExpandModel([2, 4, 16, 16])
    x = jax.random.normal(k1, (1, 4, 1, 16), dtype=jnp.float32)
    out = jax.block_until_ready(model(x))
    ref = jnp.broadcast_to(x, (2, 4, 16, 16))
    assert out.shape == (2, 4, 16, 16) and out.dtype == x.dtype
    assert jnp.array_equal(out, ref), "case 1: mismatch vs broadcast_to"

    # 2) Kept leading batch folded into one block + in-kernel sublane broadcast.
    x2 = jax.random.normal(k2, (8, 1, 256), dtype=jnp.float32)
    out2 = jax.block_until_ready(expand(x2, [8, 64, 256]))
    assert jnp.array_equal(out2, jnp.broadcast_to(x2, (8, 64, 256))), "case 2"

    # 3) Narrow trailing broadcast -> in-kernel lane densification (reps path).
    x3 = jax.random.normal(k3, (4, 256, 1, 48), dtype=jnp.float32)
    out3 = jax.block_until_ready(expand(x3, [4, 256, 16, 48]))
    assert jnp.array_equal(out3, jnp.broadcast_to(x3, (4, 256, 16, 48))), "case 3"

    # 4) Fully-broadcast leading dim folded into the block + lane broadcast.
    x4 = jax.random.normal(k4, (1, 64, 1), dtype=jnp.float32)
    out4 = jax.block_until_ready(expand(x4, [4, 64, 128]))
    assert jnp.array_equal(out4, jnp.broadcast_to(x4, (4, 64, 128))), "case 4"

    # 5) Mixed (kept + broadcast) leading dims -> per-element index decomposition.
    x5 = jax.random.normal(k5, (3, 1, 8, 1), dtype=jnp.float32)
    out5 = jax.block_until_ready(expand(x5, [3, 5, 8, 130]))
    assert jnp.array_equal(out5, jnp.broadcast_to(x5, (3, 5, 8, 130))), "case 5"

    print("KERNEL_OK")
</pallas_src>

<mosaic_0001>
module attributes {stable_mosaic.version = 11 : i64} {
  func.func @_expand_kernel(%arg0: i32, %arg1: i32, %arg2: i32, %arg3: memref<1x1x1024xf32, #tpu.memory_space<vmem>>, %arg4: memref<1x2x1024xf32, #tpu.memory_space<vmem>>) attributes {dimension_semantics = [#tpu.dimension_semantics<parallel>, #tpu.dimension_semantics<parallel>, #tpu.dimension_semantics<parallel>], iteration_bounds = array<i64: 1, 1, 1>, scalar_prefetch = 0 : i64, scratch_operands = 0 : i64, tpu.core_type = #tpu.core_type<tc>, window_params = [{transform_indices = @transform_0, window_bounds = array<i64: 1, 1, 1024>}, {transform_indices = @transform_1, window_bounds = array<i64: 1, 2, 1024>}]} {
    %c0 = arith.constant 0 : index
    %c0_0 = arith.constant 0 : index
    %c0_1 = arith.constant 0 : index
    %0 = vector.load %arg3[%c0, %c0_0, %c0_1] : memref<1x1x1024xf32, #tpu.memory_space<vmem>>, vector<1x1x1024xf32>
    %1 = vector.shape_cast %0 : vector<1x1x1024xf32> to vector<1x1x1024xf32>
    %2 = vector.broadcast %1 : vector<1x1x1024xf32> to vector<1x2x1024xf32>
    %c0_2 = arith.constant 0 : index
    %c0_3 = arith.constant 0 : index
    %c0_4 = arith.constant 0 : index
    %3 = vector.load %arg4[%c0_2, %c0_3, %c0_4] : memref<1x2x1024xf32, #tpu.memory_space<vmem>>, vector<1x2x1024xf32>
    tpu.vector_store %arg4[%c0_2, %c0_3, %c0_4], %2 {strides = array<i32>} : memref<1x2x1024xf32, #tpu.memory_space<vmem>>, vector<1x2x1024xf32>,
    return
  }
  func.func @transform_0(%arg0: i32, %arg1: i32, %arg2: i32) -> (i32, i32, i32) {
    %c0_i32 = arith.constant 0 : i32
    %c0_i32_0 = arith.constant 0 : i32
    %c0_i32_1 = arith.constant 0 : i32
    return %c0_i32, %c0_i32_0, %arg2 : i32, i32, i32
  }
  func.func @transform_1(%arg0: i32, %arg1: i32, %arg2: i32) -> (i32, i32, i32) {
    %c0_i32 = arith.constant 0 : i32
    return %arg0, %arg1, %arg2 : i32, i32, i32
  }
}

</mosaic_0001>

<bundles_post_ra>
// kernel: tpu_custom_call.1
= control target key start
LH: loop header
LB: loop body
LE: loop exit
PB: predicated region body
PF: predicated region fallthrough
CT: control target
= control target key end

     0   :  { %6 = vsyncpa [#allocation3], 0  ;;  %s174_s0 = inlined_call_operand.hbm [shape: f32[1,1,1024], index: 0, kind: input, shape index: {}]   ;;  %s175_s1 = inlined_call_operand.hbm [shape: f32[1,2,1024], index: 1, kind: output, shape index: {}]  }
   0x1   :  { %7 = vsyncpa [#allocation4], 0  ;;  %s155_s6 = smov [#allocation2]  }
   0x2   :  { %s14_s7 = sshll.u32 %s155_s6, 4  ;;  %s15_s7 = int_to_ptr.vmem [resolvable:$true] %s14_s7 }
   0x3   :  { %s119_s8 = scalar_lea.vmem %s15_s7, 128  ;;  %p124_p1 = scmp.lt.s32.totalorder %s15_s7, %s15_s7 }
   0x4   :  { %p120_p0 = scmp.ne.s32.totalorder %s15_s7, %s119_s8  ;;  %p125_p2 = scmp.lt.s32.totalorder %s119_s8, %s119_s8 }
   0x6   :  { %p126_p3 = por %p125_p2, %p124_p1 }
   0x8   :  { %p127_p4 = pnand %p126_p3, %p120_p0 }
   0xa   :  { %130 = shalt.err (!%p127_p4)
}
   0xb   :  { %17 = dma.hbm_to_vmem [thread:$0]  %s174_s0, 128, %s15_s7, [#allocation3]  }
   0xc   :  { %151 = dma.done.wait [#allocation3], 128  }
   0xd   :  { %152 = vsyncadd [#allocation3], 4294967168  ;;  %v23_v0 = vlaneseq  ;;  %v156_v1 = vmov 1983009808   ;;  %v21_v13 = vld [vmem:[#allocation2] sm:$0xff]  ;;  %s157_s0 = smov [#allocation5]  }
   0xe   :  { %v58_v2 = vunpack.c.l.s4 %v156_v1  ;;  %s99_s11 = sshll.u32 %s157_s0, 4  ;;  %s100_s11 = int_to_ptr.vmem [resolvable:$true] %s99_s11 }
   0xf   :  { %v24_v3 = vshrl.u32 %v23_v0, 7  ;;  %s131_s12 = scalar_lea.vmem %s100_s11, 256  ;;  %p136_p6 = scmp.lt.s32.totalorder %s100_s11, %s100_s11 }
  0x10   :  { %v59_v4 = vunpack.c.0.s8 %v58_v2  ;;  %p132_p5 = scmp.ne.s32.totalorder %s100_s11, %s131_s12  ;;  %p137_p7 = scmp.lt.s32.totalorder %s131_s12, %s131_s12 }
  0x11   :  { %v25_v5 = vsub.s32 0, %v24_v3  ;;  %v29_v6 = vsub.s32 1, %v24_v3  ;;  %v33_v7 = vsub.s32 2, %v24_v3  ;;  %v37_v8 = vsub.s32 3, %v24_v3 }
  0x12   :  { %v41_v9 = vsub.s32 4, %v24_v3  ;;  %v45_v10 = vsub.s32 5, %v24_v3  ;;  %v49_v11 = vsub.s32 6, %v24_v3  ;;  %v53_v12 = vsub.s32 7, %v24_v3  ;;  %p138_p8 = por %p137_p7, %p136_p6 }
  0x13   :  { %v62_v14 = vsub.s32 %v59_v4, %v24_v3  ;;  %v26_v15 = vrot.slane %v21_v13, %v25_v5  ;;  %v30_v16 = vrot.slane %v21_v13, %v29_v6  ;;  %v34_v17 = vrot.slane %v21_v13, %v33_v7 }
  0x14   :  { %v38_v18 = vrot.slane %v21_v13, %v37_v8  ;;  %v42_v19 = vrot.slane %v21_v13, %v41_v9  ;;  %v46_v20 = vrot.slane %v21_v13, %v45_v10  ;;  %v50_v21 = vrot.slane %v21_v13, %v49_v11  ;;  %p139_p9 = pnand %p138_p8, %p132_p5 }
  0x15   :  { %v54_v22 = vrot.slane %v21_v13, %v53_v12  ;;  %v55_v23 = vcombine.low %v26_v15, %v30_v16 }
  0x16   :  { %v56_v24 = vcombine.low %v34_v17, %v38_v18  ;;  %v72_v25 = vcombine.low %v42_v19, %v46_v20 }
  0x17   :  { %v73_v26 = vcombine.low %v50_v21, %v54_v22  ;;  %v63_v27 = vrot.slane %v55_v23, %v62_v14 }
  0x18   :  { %v70_v28 = vrot.slane %v56_v24, %v62_v14  ;;  %v80_v29 = vrot.slane %v72_v25, %v62_v14 }
  0x19   :  { %v87_v30 = vrot.slane %v73_v26, %v62_v14 }
  0x1a   :  { %v71_v31 = vcombine.low %v63_v27, %v70_v28 }
  0x1b   :  { %v88_v32 = vcombine.low %v80_v29, %v87_v30 }
  0x1c   :  { %91 = vst [vmem:[#allocation5] sm:$0xff] %v71_v31 }
  0x1d   :  { %92 = vst [vmem:[#allocation5 + $0x8] sm:$0xff] %v88_v32 }
  0x1e   :  { %142 = shalt.err (!%p139_p9)
}
  0x1f   :  { %102 = dma.vmem_to_hbm [thread:$0]  %s100_s11, 256, %s175_s1, [#allocation4]  }
  0x20   :  { %153 = dma.done.wait [#allocation4], 256  }
  0x21   :  { %154 = vsyncadd [#allocation4], 4294967040 }
  0x22   :  { %106 = vsyncpa [#allocation3], 1 }
  0x23   :  { %107 = vsyncpa [#allocation4], 1 }

</bundles_post_ra>
